<compile_context>
chip_gen: v6e
topology: v6e:2x2x1
jax: 0.10.0
libtpu: 0.0.40
codegen_flags: <defaults>
</compile_context>

<pallas_src>
import functools

import jax
import jax.numpy as jnp
from jax.experimental import pallas as pl
from jax.experimental.pallas import tpu as pltpu


def _make_info_nce_kernel(inv_temperature: float, n_classes: int, tile_c: int):
    """Row-tiled, class-tiled InfoNCE kernel with online logsumexp."""
    needs_col_mask = (n_classes % tile_c) != 0   # only the LAST class tile is ragged
    multi_c_tiles = n_classes > tile_c           # gather guard only pays off then

    def kernel(logits_ref, labels_ref, nll_ref, m_ref, l_ref, p_ref):
        # logits_ref: (TILE_N, TILE_C) input dtype; labels_ref: (TILE_N, 1) i32
        # nll_ref:    (TILE_N, 1) f32 per-row negative log-likelihood
        # m_ref/l_ref/p_ref: (TILE_N, 1) f32 running max / scaled sum / picked logit
        c = pl.program_id(1)
        last_c = pl.num_programs(1) - 1

        @pl.when(c == 0)
        def _():
            m_ref[...] = jnp.full_like(m_ref, -jnp.inf)
            l_ref[...] = jnp.zeros_like(l_ref)
            p_ref[...] = jnp.zeros_like(p_ref)

        # widen in-kernel (bf16 stays bf16 in HBM), scale by compile-time constant
        x = logits_ref[...].astype(jnp.float32) * inv_temperature  # (TILE_N, TILE_C)

        # tile-local class index / tile-local labels: avoids the full-tile i32 add
        # of a global-column tensor on every class step.
        local_col = jax.lax.broadcasted_iota(jnp.int32, x.shape, 1)
        local_lab = labels_ref[...] - c * tile_c                     # (TILE_N, 1)

        # --- target-logit gather: compare + select + lane-reduce ---
        # NOTE: out-of-range labels silently contribute picked=0 (unlike PyTorch,
        # which raises); documented behaviour.
        def gather():
            p_ref[...] += jnp.sum(
                jnp.where(local_col == local_lab, x, 0.0), axis=-1, keepdims=True
            )

        if multi_c_tiles:
            # Skip the full-tile compare/select/reduce on class steps that cannot
            # contain any of this row tile's labels (most steps for SimCLR labels).
            hit = jnp.any((local_lab >= 0) & (local_lab < tile_c))
            pl.when(hit)(gather)
        else:
            gather()

        # --- online (flash-softmax style) logsumexp over the class axis ---
        def lse_update(xv):
            m_prev = m_ref[...]
            m_new = jnp.maximum(m_prev, jnp.max(xv, axis=-1, keepdims=True))
            l_ref[...] = (
                jnp.exp(m_prev - m_new) * l_ref[...]
                + jnp.sum(jnp.exp(xv - m_new), axis=-1, keepdims=True)
            )
            m_ref[...] = m_new

        if needs_col_mask:
            # padded lanes exist only in the last class tile: mask only there,
            # unmasked fast path everywhere else.
            @pl.when(c == last_c)
            def _():
                valid = local_col < (n_classes - c * tile_c)
                lse_update(jnp.where(valid, x, -jnp.inf))

            @pl.when(c != last_c)
            def _():
                lse_update(x)
        else:
            lse_update(x)

        @pl.when(c == last_c)
        def _():
            nll_ref[...] = m_ref[...] + jnp.log(l_ref[...]) - p_ref[...]

    return kernel


def _choose_tiles(n: int, c: int, itemsize: int):
    """Generation-aware tile sizes.

    - class (lane) tile: full C when it fits, otherwise a large multiple of 128
      (up to 4096) so each row tile needs few class steps.
    - row (sublane) tile: each logits VMEM buffer <= ~8 MiB; double-buffered that
      is ~16 MiB, which plus lane-padded row vectors stays well under v7x's
      64 MiB VMEM per TensorCore.
    - at least 2 row tiles when N >= 16 so v7x's two TensorCores both get work.
    """
    tile_c = c if c <= 4096 else 4096
    budget_bytes = 8 * 1024 * 1024
    max_rows = max(8, (budget_bytes // (tile_c * itemsize)) // 8 * 8)
    if n < 16:
        tile_n = min(n, max_rows)
    else:
        half = max(8, (n // 2) // 8 * 8)
        tile_n = min(half, max_rows, 1024)
    return tile_n, tile_c


@functools.partial(jax.jit, static_argnames=("temperature", "tile_n", "tile_c"))
def info_nce_loss(logits: jax.Array, labels: jax.Array, temperature: float,
                  tile_n: int | None = None, tile_c: int | None = None) -> jax.Array:
    """Pallas-TPU implementation of InfoNceLoss.forward(logits, labels)."""
    n, c = logits.shape
    itemsize = jnp.dtype(logits.dtype).itemsize
    auto_n, auto_c = _choose_tiles(n, c, itemsize)
    tile_n = auto_n if tile_n is None else tile_n
    tile_c = auto_c if tile_c is None else tile_c

    grid = (pl.cdiv(n, tile_n), pl.cdiv(c, tile_c))
    labels2d = labels.reshape(n, 1).astype(jnp.int32)

    kernel = _make_info_nce_kernel(1.0 / temperature, c, tile_c)

    # Explicit scoped-VMEM budget: double-buffered logits tiles plus lane-padded
    # (TILE_N, 1) row vectors, with 2x headroom, capped at 48 MiB so it still fits
    # v7x's 64 MiB/core (defaults are only 16 MiB on v5e / 32 MiB on v6e/v7x).
    vmem_est = (
        2 * tile_n * tile_c * itemsize        # double-buffered logits tiles
        + 7 * tile_n * 128 * 4                # labels/out (x2 bufs) + 3 scratch, lane-padded
    )
    vmem_limit = int(min(max(2 * vmem_est, 16 * 1024 * 1024), 48 * 1024 * 1024))

    nll = pl.pallas_call(
        kernel,
        out_shape=jax.ShapeDtypeStruct((n, 1), jnp.float32),
        grid_spec=pltpu.PrefetchScalarGridSpec(
            num_scalar_prefetch=0,
            grid=grid,
            in_specs=[
                pl.BlockSpec((tile_n, tile_c), lambda i, k: (i, k)),   # logits tile
                pl.BlockSpec((tile_n, 1), lambda i, k: (i, 0)),        # labels tile
            ],
            out_specs=pl.BlockSpec((tile_n, 1), lambda i, k: (i, 0)),  # resident over k
            scratch_shapes=[pltpu.VMEM((tile_n, 1), jnp.float32)] * 3,  # m, l, picked
        ),
        compiler_params=pltpu.CompilerParams(
            dimension_semantics=("parallel", "arbitrary"),
            vmem_limit_bytes=vmem_limit,
        ),
        cost_estimate=pl.CostEstimate(
            flops=6 * n * c,
            transcendentals=n * c,
            bytes_accessed=n * c * itemsize + 2 * n * 4,
        ),
    )(logits, labels2d)  # logits in native dtype (no host-side f32 cast)

    # CrossEntropyLoss default reduction="mean"
    return jnp.mean(nll)


def _reference(logits, labels, temperature):
    x = logits.astype(jnp.float32) / temperature
    logp = jax.nn.log_softmax(x, axis=-1)
    return -jnp.mean(jnp.take_along_axis(logp, labels[:, None], axis=-1))


if __name__ == "__main__":
    key = jax.random.PRNGKey(0)
    k1, k2, k3, k4, k5, k6 = jax.random.split(key, 6)
    temperature = 0.07

    # Test 1: toy SimCLR shape — single block, f32, auto tiles.
    N1, C1 = 8, 16
    logits1 = jax.random.normal(k1, (N1, C1), dtype=jnp.float32)
    labels1 = jax.random.randint(k2, (N1,), 0, C1, dtype=jnp.int32)
    loss1 = jax.block_until_ready(info_nce_loss(logits1, labels1, temperature))
    ref1 = _reference(logits1, labels1, temperature)
    assert jnp.allclose(loss1, ref1, atol=1e-4, rtol=1e-4), (loss1, ref1)

    # Test 2: exercises the (row x class) grid, online-LSE, the last-step-only
    # ragged class-tile mask (320 % 128 != 0), the pl.when gather guard, and bf16
    # passing through the DMA untouched.
    N2, C2 = 24, 320
    logits2 = jax.random.normal(k3, (N2, C2), dtype=jnp.float32).astype(jnp.bfloat16)
    labels2 = jax.random.randint(k4, (N2,), 0, C2, dtype=jnp.int32)
    loss2 = jax.block_until_ready(
        info_nce_loss(logits2, labels2, temperature, tile_n=8, tile_c=128)
    )
    ref2 = _reference(logits2.astype(jnp.float32), labels2, temperature)
    assert jnp.allclose(loss2, ref2, atol=1e-3, rtol=1e-3), (loss2, ref2)

    # Test 3: auto tiles with N >= 16 -> two row tiles (v7x megacore path),
    # single full-width class tile, f32.
    N3, C3 = 32, 384
    logits3 = jax.random.normal(k5, (N3, C3), dtype=jnp.float32)
    labels3 = jax.random.randint(k6, (N3,), 0, C3, dtype=jnp.int32)
    loss3 = jax.block_until_ready(info_nce_loss(logits3, labels3, temperature))
    ref3 = _reference(logits3, labels3, temperature)
    assert jnp.allclose(loss3, ref3, atol=1e-4, rtol=1e-4), (loss3, ref3)

    print("KERNEL_OK")
</pallas_src>

<mosaic_0001>
module attributes {stable_mosaic.version = 11 : i64} {
  func.func @kernel(%arg0: i32, %arg1: i32, %arg2: memref<8x16xf32, #tpu.memory_space<vmem>>, %arg3: memref<8x1xi32, #tpu.memory_space<vmem>>, %arg4: memref<8x1xf32, #tpu.memory_space<vmem>>, %arg5: memref<8x1xf32, #tpu.memory_space<vmem>>, %arg6: memref<8x1xf32, #tpu.memory_space<vmem>>, %arg7: memref<8x1xf32, #tpu.memory_space<vmem>>) attributes {dimension_semantics = [#tpu.dimension_semantics<parallel>, #tpu.dimension_semantics<arbitrary>], iteration_bounds = array<i64: 1, 1>, scalar_prefetch = 0 : i64, scratch_operands = 3 : i64, tpu.core_type = #tpu.core_type<tc>, window_params = [{transform_indices = @transform_0, window_bounds = array<i64: 8, 16>}, {transform_indices = @transform_1, window_bounds = array<i64: 8, 1>}, {transform_indices = @transform_2, window_bounds = array<i64: 8, 1>}]} {
    %c0_i32 = arith.constant 0 : i32
    %0 = arith.cmpi eq, %arg1, %c0_i32 : i32
    %1 = arith.extui %0 : i1 to i32
    %c0_i32_0 = arith.constant 0 : i32
    %2 = arith.cmpi ne, %1, %c0_i32_0 : i32
    scf.if %2 {
      %cst_22 = arith.constant 0xFF800000 : f32
      %39 = vector.broadcast %cst_22 : f32 to vector<8x1xf32>
      %c0_23 = arith.constant 0 : index
      %c0_24 = arith.constant 0 : index
      %40 = vector.load %arg5[%c0_23, %c0_24] : memref<8x1xf32, #tpu.memory_space<vmem>>, vector<8x1xf32>
      tpu.vector_store %arg5[%c0_23, %c0_24], %39 {strides = array<i32>} : memref<8x1xf32, #tpu.memory_space<vmem>>, vector<8x1xf32>,
      %cst_25 = arith.constant 0.000000e+00 : f32
      %41 = vector.broadcast %cst_25 : f32 to vector<8x1xf32>
      %c0_26 = arith.constant 0 : index
      %c0_27 = arith.constant 0 : index
      %42 = vector.load %arg6[%c0_26, %c0_27] : memref<8x1xf32, #tpu.memory_space<vmem>>, vector<8x1xf32>
      tpu.vector_store %arg6[%c0_26, %c0_27], %41 {strides = array<i32>} : memref<8x1xf32, #tpu.memory_space<vmem>>, vector<8x1xf32>,
      %cst_28 = arith.constant 0.000000e+00 : f32
      %43 = vector.broadcast %cst_28 : f32 to vector<8x1xf32>
      %c0_29 = arith.constant 0 : index
      %c0_30 = arith.constant 0 : index
      %44 = vector.load %arg7[%c0_29, %c0_30] : memref<8x1xf32, #tpu.memory_space<vmem>>, vector<8x1xf32>
      tpu.vector_store %arg7[%c0_29, %c0_30], %43 {strides = array<i32>} : memref<8x1xf32, #tpu.memory_space<vmem>>, vector<8x1xf32>,
    } else {
    }
    %c0 = arith.constant 0 : index
    %c0_1 = arith.constant 0 : index
    %3 = vector.load %arg2[%c0, %c0_1] : memref<8x16xf32, #tpu.memory_space<vmem>>, vector<8x16xf32>
    %cst = arith.constant 14.2857141 : f32
    %4 = vector.broadcast %cst : f32 to vector<8x16xf32>
    %5 = arith.mulf %3, %4 : vector<8x16xf32>
    %6 = tpu.iota {dimensions = array<i32: 1>} : vector<8x16xi32>
    %c0_2 = arith.constant 0 : index
    %c0_3 = arith.constant 0 : index
    %7 = vector.load %arg3[%c0_2, %c0_3] : memref<8x1xi32, #tpu.memory_space<vmem>>, vector<8x1xi32>
    %c16_i32 = arith.constant 16 : i32
    %8 = arith.muli %arg1, %c16_i32 : i32
    %9 = vector.broadcast %8 : i32 to vector<8x1xi32>
    %10 = arith.subi %7, %9 : vector<8x1xi32>
    %c0_4 = arith.constant 0 : index
    %c0_5 = arith.constant 0 : index
    %11 = vector.load %arg7[%c0_4, %c0_5] : memref<8x1xf32, #tpu.memory_space<vmem>>, vector<8x1xf32>
    %12 = vector.broadcast %10 : vector<8x1xi32> to vector<8x16xi32>
    %13 = arith.cmpi eq, %6, %12 : vector<8x16xi32>
    %cst_6 = arith.constant 0.000000e+00 : f32
    %14 = vector.broadcast %cst_6 : f32 to vector<8x16xf32>
    %15 = arith.select %13, %5, %14 : vector<8x16xi1>, vector<8x16xf32>
    %cst_7 = arith.constant dense<0.000000e+00> : vector<8xf32>
    %16 = vector.multi_reduction <add>, %15, %cst_7 [1] : vector<8x16xf32> to vector<8xf32>
    %17 = vector.shape_cast %16 : vector<8xf32> to vector<8x1xf32>
    %18 = arith.addf %11, %17 : vector<8x1xf32>
    %c0_8 = arith.constant 0 : index
    %c0_9 = arith.constant 0 : index
    %19 = vector.load %arg7[%c0_8, %c0_9] : memref<8x1xf32, #tpu.memory_space<vmem>>, vector<8x1xf32>
    tpu.vector_store %arg7[%c0_8, %c0_9], %18 {strides = array<i32>} : memref<8x1xf32, #tpu.memory_space<vmem>>, vector<8x1xf32>,
    %c0_10 = arith.constant 0 : index
    %c0_11 = arith.constant 0 : index
    %20 = vector.load %arg5[%c0_10, %c0_11] : memref<8x1xf32, #tpu.memory_space<vmem>>, vector<8x1xf32>
    %cst_12 = arith.constant dense<0xFF800000> : vector<8xf32>
    %21 = vector.multi_reduction <maximumf>, %5, %cst_12 [1] : vector<8x16xf32> to vector<8xf32>
    %22 = vector.shape_cast %21 : vector<8xf32> to vector<8x1xf32>
    %23 = arith.maximumf %20, %22 : vector<8x1xf32>
    %24 = arith.subf %20, %23 : vector<8x1xf32>
    %25 = math.exp %24 : vector<8x1xf32>
    %c0_13 = arith.constant 0 : index
    %c0_14 = arith.constant 0 : index
    %26 = vector.load %arg6[%c0_13, %c0_14] : memref<8x1xf32, #tpu.memory_space<vmem>>, vector<8x1xf32>
    %27 = arith.mulf %25, %26 : vector<8x1xf32>
    %28 = vector.broadcast %23 : vector<8x1xf32> to vector<8x16xf32>
    %29 = arith.subf %5, %28 : vector<8x16xf32>
    %30 = math.exp %29 : vector<8x16xf32>
    %cst_15 = arith.constant dense<0.000000e+00> : vector<8xf32>
    %31 = vector.multi_reduction <add>, %30, %cst_15 [1] : vector<8x16xf32> to vector<8xf32>
    %32 = vector.shape_cast %31 : vector<8xf32> to vector<8x1xf32>
    %33 = arith.addf %27, %32 : vector<8x1xf32>
    %c0_16 = arith.constant 0 : index
    %c0_17 = arith.constant 0 : index
    %34 = vector.load %arg6[%c0_16, %c0_17] : memref<8x1xf32, #tpu.memory_space<vmem>>, vector<8x1xf32>
    tpu.vector_store %arg6[%c0_16, %c0_17], %33 {strides = array<i32>} : memref<8x1xf32, #tpu.memory_space<vmem>>, vector<8x1xf32>,
    %c0_18 = arith.constant 0 : index
    %c0_19 = arith.constant 0 : index
    %35 = vector.load %arg5[%c0_18, %c0_19] : memref<8x1xf32, #tpu.memory_space<vmem>>, vector<8x1xf32>
    tpu.vector_store %arg5[%c0_18, %c0_19], %23 {strides = array<i32>} : memref<8x1xf32, #tpu.memory_space<vmem>>, vector<8x1xf32>,
    %c0_i32_20 = arith.constant 0 : i32
    %36 = arith.cmpi eq, %arg1, %c0_i32_20 : i32
    %37 = arith.extui %36 : i1 to i32
    %c0_i32_21 = arith.constant 0 : i32
    %38 = arith.cmpi ne, %37, %c0_i32_21 : i32
    scf.if %38 {
      %c0_22 = arith.constant 0 : index
      %c0_23 = arith.constant 0 : index
      %39 = vector.load %arg5[%c0_22, %c0_23] : memref<8x1xf32, #tpu.memory_space<vmem>>, vector<8x1xf32>
      %c0_24 = arith.constant 0 : index
      %c0_25 = arith.constant 0 : index
      %40 = vector.load %arg6[%c0_24, %c0_25] : memref<8x1xf32, #tpu.memory_space<vmem>>, vector<8x1xf32>
      %41 = math.log %40 : vector<8x1xf32>
      %42 = arith.addf %39, %41 : vector<8x1xf32>
      %c0_26 = arith.constant 0 : index
      %c0_27 = arith.constant 0 : index
      %43 = vector.load %arg7[%c0_26, %c0_27] : memref<8x1xf32, #tpu.memory_space<vmem>>, vector<8x1xf32>
      %44 = arith.subf %42, %43 : vector<8x1xf32>
      %c0_28 = arith.constant 0 : index
      %c0_29 = arith.constant 0 : index
      %45 = vector.load %arg4[%c0_28, %c0_29] : memref<8x1xf32, #tpu.memory_space<vmem>>, vector<8x1xf32>
      tpu.vector_store %arg4[%c0_28, %c0_29], %44 {strides = array<i32>} : memref<8x1xf32, #tpu.memory_space<vmem>>, vector<8x1xf32>,
    } else {
    }
    return
  }
  func.func @transform_0(%arg0: i32, %arg1: i32) -> (i32, i32) {
    %c0_i32 = arith.constant 0 : i32
    return %arg0, %arg1 : i32, i32
  }
  func.func @transform_1(%arg0: i32, %arg1: i32) -> (i32, i32) {
    %c0_i32 = arith.constant 0 : i32
    %c0_i32_0 = arith.constant 0 : i32
    return %arg0, %c0_i32 : i32, i32
  }
  func.func @transform_2(%arg0: i32, %arg1: i32) -> (i32, i32) {
    %c0_i32 = arith.constant 0 : i32
    %c0_i32_0 = arith.constant 0 : i32
    return %arg0, %c0_i32 : i32, i32
  }
}

</mosaic_0001>

<bundles_post_ra>
// kernel: info_nce_loss.1
= control target key start
LH: loop header
LB: loop body
LE: loop exit
PB: predicated region body
PF: predicated region fallthrough
CT: control target
= control target key end

     0   :  { %vm15_vm0 = vcmask 7168   ;;  %vm33_vm1 = vcmask 130048   ;;  %v90_v1 = vmov -inf   ;;  %v91_v4 = vmov 0   ;;  %s127_s0 = inlined_call_operand.vmem [shape: f32[8,16], index: 0, kind: input, shape index: {}]   ;;  %s128_s1 = inlined_call_operand.vmem [shape: s32[8,1], index: 1, kind: input, shape index: {}]   ;;  %s129_s2 = inlined_call_operand.vmem [shape: f32[8,1], index: 2, kind: output, shape index: {}]  }
   0x1   :  { %v19_v0 = vld [vmem:[%s127_s0] sm:$0xff]  ;;  %16 = vst.msk [vmem:[#allocation2] sm:$0xff] %vm15_vm0, %v90_v1  ;;  %82 = vset.pattern.permute.xlu0 %v91_v4  ;;  %83 = vset.pattern.permute.xlu1 %v91_v4  ;;  %v92_v6 = vmov 0.0   ;;  %v21_v14 = vlaneseq }
   0x2   :  { %v20_v2 = vmul.f32 14.285714, %v19_v0  ;;  %v23_v5 = vld [vmem:[%s128_s1] sm:$0xff]  ;;  %17 = vst.msk [vmem:[#allocation3] sm:$0xff] %vm15_vm0, %v92_v6  ;;  %18 = vst.msk [vmem:[#allocation4] sm:$0xff] %vm15_vm0, %v92_v6 }
   0x3   :  { %29 = vperm.xlu1 %83, %v23_v5   ;;  %v22_v15 = vand.u32 127, %v21_v14 }
   0x4   :  { %v41_v3 = vsel %vm33_vm1, %v20_v2, -inf }
   0x5   :  { %42 = vmax.xlane.f32.xlu0 %v41_v3 }
   0x8   :  { %v40_v7 = vld [vmem:[#allocation2] sm:$0xff] }
   0x9   :  { %v48_v23 = vld [vmem:[#allocation3] sm:$0xff]  ;;  %v27_v27 = vld [vmem:[#allocation4] sm:$0xff] }
  0x7e   :  { %v30_v16 = vpop.permute.xlu1 %29 }
  0x7f   :  { %vm31_vm2 = vcmp.eq.s32.totalorder %v22_v15, %v30_v16 }
  0x80   :  { %v32_v18 = vsel %vm31_vm2, %v20_v2, 0.0 }
  0x81   :  { %v34_v20 = vsel %vm33_vm1, %v32_v18, 0.0 }
  0x8e   :  { %v43_v8 = vpop.xlane.xlu0 %42 }
  0x8f   :  { %v44_v9 = vmax.f32 %v40_v7, %v43_v8 }
  0x91   :  { %v45_v10 = vsub.f32 %v40_v7, %v44_v9  ;;  %63 = vst.msk [vmem:[#allocation2] sm:$0xff] %vm15_vm0, %v44_v9  ;;  %52 = vperm.xlu0 %82, %v44_v9  }
  0x93   :  { %v46_v21 = vmul.f32 1.442695, %v45_v10 }
  0x98   :  { %v67_v33 = vld [vmem:[#allocation2] sm:$0xff] }
 0x10c   :  { %v53_v11 = vpop.permute.xlu0 %52 }
 0x10d   :  { %v55_v12 = vsub.f32 %v20_v2, %v53_v11 }
 0x10f   :  { %v56_v13 = vmul.f32 1.442695, %v55_v12 }
 0x111   :  { %84 = vpow2.f32 %v56_v13 }
 0x112   :  { %86 = vpow2.f32 %v46_v21 }
 0x11e   :  { %v85_v17 = vpop.eup %84 }
 0x11f   :  { %v58_v19 = vsel %vm33_vm1, %v85_v17, 0.0  ;;  %v87_v22 = vpop.eup %86 }
 0x120   :  { %59 = vadd.xlane.f32.xlu1 %v58_v19  ;;  %v49_v24 = vmul.f32 %v87_v22, %v48_v23 }
 0x124   :  { %35 = vadd.xlane.f32.xlu1 %v34_v20 }
 0x1a9   :  { %v60_v25 = vpop.xlane.xlu1 %59 }
 0x1aa   :  { %v61_v26 = vadd.f32 %v60_v25, %v49_v24 }
 0x1ac   :  { %62 = vst.msk [vmem:[#allocation3] sm:$0xff] %vm15_vm0, %v61_v26 }
 0x1ad   :  { %v36_v28 = vpop.xlane.xlu1 %35 }
 0x1ae   :  { %v37_v29 = vadd.f32 %v36_v28, %v27_v27 }
 0x1b0   :  { %39 = vst.msk [vmem:[#allocation4] sm:$0xff] %vm15_vm0, %v37_v29 }
 0x1b3   :  { %v68_v30 = vld [vmem:[#allocation3] sm:$0xff] }
 0x1b4   :  { %88 = vlog2.f32 %v68_v30 }
 0x1b7   :  { %v72_v34 = vld [vmem:[#allocation4] sm:$0xff] }
 0x1c1   :  { %v89_v31 = vpop.eup %88 }
 0x1c2   :  { %v70_v32 = vmul.f32 0.6931472, %v89_v31 }
 0x1c4   :  { %v71_v35 = vadd.f32 %v70_v32, %v67_v33 }
 0x1c6   :  { %v73_v36 = vsub.f32 %v71_v35, %v72_v34 }
 0x1c8   :  { %74 = vst.msk [vmem:[%s129_s2] sm:$0xff] %vm15_vm0, %v73_v36 }

</bundles_post_ra>
